<compile_context>
chip_gen: v5e
topology: v5e:2x2
jax: 0.10.0
libtpu: 0.0.40
codegen_flags: <defaults>
</compile_context>

<pallas_src>
import functools

import jax
import jax.numpy as jnp
from jax.experimental import pallas as pl
from jax.experimental.pallas import tpu as pltpu


def gaussian_layer_kernel(x_ref, c_ref, w_ref, o_ref, ev_ref, *,
                          zoom, pan, inv_width, reps):
    """One (batch tile, output tile) grid step.

    x_ref : (TB, I)   input tile
    c_ref : (1, K)    per-column centers, K = G*I (resident)
    w_ref : (K, TO)   pre-merged effective weights block
    o_ref : (TB, TO)  output tile
    ev_ref: (TB, K)   VMEM scratch caching the Gaussian basis for this batch tile
    """
    # Recompute the basis only on the first output tile of each batch tile;
    # reuse the cached basis for the remaining output tiles.
    @pl.when(pl.program_id(1) == 0)
    def _():
        xt = jnp.tanh(x_ref[...]) * zoom + pan                      # (TB, I)
        if reps == 1:
            xg = xt
        else:
            xg = jnp.concatenate([xt] * reps, axis=1)               # (TB, K) lane-dense
        d = (xg - c_ref[...]) * inv_width                           # VPU, full lanes
        ev_ref[...] = jnp.exp(-0.5 * d * d)                         # EUP, one sweep

    # (TB, K) x (K, TO) -> (TB, TO): one MXU matmul, natural (K, O) orientation.
    o_ref[...] = jnp.dot(ev_ref[...], w_ref[...],
                         preferred_element_type=jnp.float32).astype(o_ref.dtype)


def custom_gaussian_layer(x, weights, coefficients, grid_range):
    """x: (B, I) f32; weights: (O, I); coefficients: (O, I, G); grid_range static."""
    B, I = x.shape
    O, I2, G = coefficients.shape
    assert I2 == I
    K = G * I

    lo, hi = float(grid_range[0]), float(grid_range[-1])
    zoom = (hi - lo) / 2.0
    pan = (hi + lo) / 2.0
    width = zoom / (G - 1)          # NOTE: G == 1 divides by zero (same as PyTorch)
    inv_width = 1.0 / width

    # Non-learnable linspace centers, replicated per input column: [g*I + i] = c_g.
    centers = jnp.linspace(lo, hi, G, dtype=jnp.float32)                 # (G,)
    centers_row = jnp.repeat(centers, I).reshape(1, K)                   # (1, K)

    # Pre-merge parameters once (input independent):
    # eff_w[g*I + i, o] = coefficients[o, i, g] * weights[o, i]
    eff_w = jnp.transpose(coefficients * weights[:, :, None], (2, 1, 0))  # (G, I, O)
    eff_w = eff_w.reshape(K, O).astype(jnp.float32)

    # --- tiling ---------------------------------------------------------------
    TB = B if B <= 256 else 256                          # batch tile (rows)
    if O <= 512 or O % 128 != 0:
        TO = O                                           # full output dim resident
    else:
        TO = 512 if O % 512 == 0 else (256 if O % 256 == 0 else 128)

    grid = (pl.cdiv(B, TB), pl.cdiv(O, TO))

    def _pad(n, m):
        return ((n + m - 1) // m) * m

    f32 = 4
    vmem_est = (
        _pad(TB, 8) * _pad(K, 128) * f32                 # ev scratch (basis cache)
        + 2 * _pad(TB, 8) * _pad(I, 128) * f32           # x tiles (double buffered)
        + 2 * _pad(TB, 8) * _pad(TO, 128) * f32          # out tiles
        + 2 * _pad(K, 8) * _pad(TO, 128) * f32           # weight blocks
        + 2 * 8 * _pad(K, 128) * f32                     # centers row
    )
    vmem_limit = min(max(int(1.3 * vmem_est), 32 * 1024 * 1024), 64 * 1024 * 1024)

    kernel = functools.partial(gaussian_layer_kernel, zoom=zoom, pan=pan,
                               inv_width=inv_width, reps=G)

    return pl.pallas_call(
        kernel,
        out_shape=jax.ShapeDtypeStruct((B, O), jnp.float32),
        grid=grid,
        in_specs=[
            pl.BlockSpec((TB, I), lambda b, o: (b, 0)),      # batch-tiled input
            pl.BlockSpec((1, K), lambda b, o: (0, 0)),       # resident centers row
            pl.BlockSpec((K, TO), lambda b, o: (0, o)),      # weight block per o-tile
        ],
        out_specs=pl.BlockSpec((TB, TO), lambda b, o: (b, o)),
        scratch_shapes=[pltpu.VMEM((TB, K), jnp.float32)],   # per-batch-tile basis cache
        compiler_params=pltpu.CompilerParams(
            dimension_semantics=("parallel", "arbitrary"),
            vmem_limit_bytes=vmem_limit),
    )(x.astype(jnp.float32), centers_row, eff_w)


def reference_forward(x, weights, coefficients, grid_range):
    O, I, G = coefficients.shape
    lo, hi = float(grid_range[0]), float(grid_range[-1])
    zoom = (hi - lo) / 2.0
    pan = (hi + lo) / 2.0
    width = zoom / (G - 1)
    centers = jnp.linspace(lo, hi, G, dtype=jnp.float32)
    xt = jnp.tanh(x) * zoom + pan
    ev = jnp.exp(-0.5 * ((xt[:, :, None] - centers[None, None, :]) / width) ** 2)
    transformed = jnp.einsum('big,oig->boi', ev, coefficients)
    return jnp.einsum('boi,oi->bo', transformed, weights)


if __name__ == "__main__":
    batch = 8
    input_size = 16
    output_size = 32
    grid_count = 8
    grid_range = (-1.0, 1.0)

    key = jax.random.PRNGKey(0)
    kx, kw, kc = jax.random.split(key, 3)

    x = jax.random.normal(kx, (batch, input_size), dtype=jnp.float32)
    # nn.Parameter(torch.randn(output_size, input_size))
    weights = jax.random.normal(kw, (output_size, input_size), dtype=jnp.float32)
    # per (o, i) GaussianBasisFunction: torch.randn(grid_count) * 0.1
    coefficients = 0.1 * jax.random.normal(
        kc, (output_size, input_size, grid_count), dtype=jnp.float32)

    out = custom_gaussian_layer(x, weights, coefficients, grid_range)
    out = jax.block_until_ready(out)

    ref = reference_forward(x, weights, coefficients, grid_range)
    assert out.shape == (batch, output_size)
    assert jnp.allclose(out, ref, rtol=1e-4, atol=1e-4), "mismatch vs reference"

    print("KERNEL_OK")
</pallas_src>

<mosaic_0001>
module attributes {stable_mosaic.version = 11 : i64} {
  func.func @gaussian_layer_kernel(%arg0: i32, %arg1: i32, %arg2: memref<8x16xf32, #tpu.memory_space<vmem>>, %arg3: memref<1x128xf32, #tpu.memory_space<vmem>>, %arg4: memref<128x32xf32, #tpu.memory_space<vmem>>, %arg5: memref<8x32xf32, #tpu.memory_space<vmem>>, %arg6: memref<8x128xf32, #tpu.memory_space<vmem>>) attributes {dimension_semantics = [#tpu.dimension_semantics<parallel>, #tpu.dimension_semantics<arbitrary>], iteration_bounds = array<i64: 1, 1>, scalar_prefetch = 0 : i64, scratch_operands = 1 : i64, tpu.core_type = #tpu.core_type<tc>, window_params = [{transform_indices = @transform_0, window_bounds = array<i64: 8, 16>}, {pipeline_mode = #tpu.pipeline_mode<synchronous>, transform_indices = @transform_1, window_bounds = array<i64: 1, 128>}, {transform_indices = @transform_2, window_bounds = array<i64: 128, 32>}, {transform_indices = @transform_3, window_bounds = array<i64: 8, 32>}]} {
    %c0_i32 = arith.constant 0 : i32
    %0 = arith.cmpi eq, %arg1, %c0_i32 : i32
    %1 = arith.extui %0 : i1 to i32
    %c0_i32_0 = arith.constant 0 : i32
    %2 = arith.cmpi ne, %1, %c0_i32_0 : i32
    scf.if %2 {
      %c0_6 = arith.constant 0 : index
      %c0_7 = arith.constant 0 : index
      %7 = vector.load %arg2[%c0_6, %c0_7] : memref<8x16xf32, #tpu.memory_space<vmem>>, vector<8x16xf32>
      %8 = math.tanh %7 : vector<8x16xf32>
      %cst_8 = arith.constant 1.000000e+00 : f32
      %9 = vector.broadcast %cst_8 : f32 to vector<8x16xf32>
      %10 = arith.mulf %8, %9 : vector<8x16xf32>
      %cst_9 = arith.constant 0.000000e+00 : f32
      %11 = vector.broadcast %cst_9 : f32 to vector<8x16xf32>
      %12 = arith.addf %10, %11 : vector<8x16xf32>
      %13 = tpu.concatenate %12, %12, %12, %12, %12, %12, %12, %12 in 1 : vector<8x16xf32>, vector<8x16xf32>, vector<8x16xf32>, vector<8x16xf32>, vector<8x16xf32>, vector<8x16xf32>, vector<8x16xf32>, vector<8x16xf32> -> vector<8x128xf32>
      %c0_10 = arith.constant 0 : index
      %c0_11 = arith.constant 0 : index
      %14 = vector.load %arg3[%c0_10, %c0_11] : memref<1x128xf32, #tpu.memory_space<vmem>>, vector<1x128xf32>
      %15 = vector.broadcast %14 : vector<1x128xf32> to vector<8x128xf32>
      %16 = arith.subf %13, %15 : vector<8x128xf32>
      %cst_12 = arith.constant 7.000000e+00 : f32
      %17 = vector.broadcast %cst_12 : f32 to vector<8x128xf32>
      %18 = arith.mulf %16, %17 : vector<8x128xf32>
      %cst_13 = arith.constant -5.000000e-01 : f32
      %19 = vector.broadcast %cst_13 : f32 to vector<8x128xf32>
      %20 = arith.mulf %19, %18 : vector<8x128xf32>
      %21 = arith.mulf %20, %18 : vector<8x128xf32>
      %22 = math.exp %21 : vector<8x128xf32>
      %c0_14 = arith.constant 0 : index
      %c0_15 = arith.constant 0 : index
      %23 = vector.load %arg6[%c0_14, %c0_15] : memref<8x128xf32, #tpu.memory_space<vmem>>, vector<8x128xf32>
      tpu.vector_store %arg6[%c0_14, %c0_15], %22 {strides = array<i32>} : memref<8x128xf32, #tpu.memory_space<vmem>>, vector<8x128xf32>,
    } else {
    }
    %c0 = arith.constant 0 : index
    %c0_1 = arith.constant 0 : index
    %3 = vector.load %arg6[%c0, %c0_1] : memref<8x128xf32, #tpu.memory_space<vmem>>, vector<8x128xf32>
    %c0_2 = arith.constant 0 : index
    %c0_3 = arith.constant 0 : index
    %4 = vector.load %arg4[%c0_2, %c0_3] : memref<128x32xf32, #tpu.memory_space<vmem>>, vector<128x32xf32>
    %cst = arith.constant dense<0.000000e+00> : vector<8x32xf32>
    %5 = tpu.matmul %3, %4, %cst {dimension_numbers = #tpu.dot_dimension_numbers<[1], [0], [0], [1], [0, 0, 1, 1], [], []>} : vector<8x128xf32>, vector<128x32xf32>, vector<8x32xf32> -> vector<8x32xf32>
    %c0_4 = arith.constant 0 : index
    %c0_5 = arith.constant 0 : index
    %6 = vector.load %arg5[%c0_4, %c0_5] : memref<8x32xf32, #tpu.memory_space<vmem>>, vector<8x32xf32>
    tpu.vector_store %arg5[%c0_4, %c0_5], %5 {strides = array<i32>} : memref<8x32xf32, #tpu.memory_space<vmem>>, vector<8x32xf32>,
    return
  }
  func.func @transform_0(%arg0: i32, %arg1: i32) -> (i32, i32) {
    %c0_i32 = arith.constant 0 : i32
    %c0_i32_0 = arith.constant 0 : i32
    return %arg0, %c0_i32 : i32, i32
  }
  func.func @transform_1(%arg0: i32, %arg1: i32) -> (i32, i32) {
    %c0_i32 = arith.constant 0 : i32
    %c0_i32_0 = arith.constant 0 : i32
    %c0_i32_1 = arith.constant 0 : i32
    return %c0_i32, %c0_i32_0 : i32, i32
  }
  func.func @transform_2(%arg0: i32, %arg1: i32) -> (i32, i32) {
    %c0_i32 = arith.constant 0 : i32
    %c0_i32_0 = arith.constant 0 : i32
    return %c0_i32, %arg1 : i32, i32
  }
  func.func @transform_3(%arg0: i32, %arg1: i32) -> (i32, i32) {
    %c0_i32 = arith.constant 0 : i32
    return %arg0, %arg1 : i32, i32
  }
}

</mosaic_0001>

<bundles_post_ra>
// kernel: tpu_custom_call.1
= control target key start
LH: loop header
LB: loop body
LE: loop exit
PB: predicated region body
PF: predicated region fallthrough
CT: control target
= control target key end

     0   :  { %s250_s0 = inlined_call_operand.vmem [shape: f32[8,16], index: 0, kind: input, shape index: {}]   ;;  %s251_s1 = inlined_call_operand.vmem [shape: f32[1,128], index: 1, kind: input, shape index: {}]   ;;  %s252_s2 = inlined_call_operand.vmem [shape: f32[128,32], index: 2, kind: input, shape index: {}]   ;;  %s253_s3 = inlined_call_operand.hbm [shape: f32[8,32], index: 3, kind: output, shape index: {}]  }
   0x1   :  { %v19_v0 = vld [vmem:[%s250_s0] sm:$0xff] }
   0x2   :  { %133 = vtanh.f32 %v19_v0 }
   0x3   :  { %8 = vsyncpa [#allocation4], 0  ;;  %s163_s14 = smov 16   ;;  %s164_s15 = smov 48   ;;  %v85_v2 = vld [vmem:[%s252_s2 + $0x78] sm:$0xff]  ;;  %v84_v3 = vld [vmem:[%s252_s2 + $0x70] sm:$0xff] }
   0x4   :  { %s165_s16 = smov 80   ;;  %s166_s17 = smov 32   ;;  %86 = vmatpush.msra.mxu0 %v85_v2  ;;  %v83_v4 = vld [vmem:[%s252_s2 + $0x68] sm:$0xff]  ;;  %v82_v5 = vld [vmem:[%s252_s2 + $0x60] sm:$0xff]  ;;  %v81_v6 = vld [vmem:[%s252_s2 + $0x58] sm:$0xff]  ;;  %vm44_vm0 = vcmask 130048  }
   0x5   :  { %s167_s18 = smov 64   ;;  %s168_s19 = smov 96   ;;  %v80_v7 = vld [vmem:[%s252_s2 + $0x50] sm:$0xff]  ;;  %v79_v8 = vld [vmem:[%s252_s2 + $0x48] sm:$0xff]  ;;  %v78_v9 = vld [vmem:[%s252_s2 + $0x40] sm:$0xff]  ;;  %vm46_vm1 = vcmask 261120  }
   0x6   :  { %s169_s20 = smov 112   ;;  %87 = vmatpush.msra.mxu0 %v84_v3  ;;  %v77_v10 = vld [vmem:[%s252_s2 + $0x38] sm:$0xff]  ;;  %v76_v11 = vld [vmem:[%s252_s2 + $0x30] sm:$0xff]  ;;  %v75_v12 = vld [vmem:[%s252_s2 + $0x28] sm:$0xff]  ;;  %vm48_vm2 = vcmask 392192   ;;  %vm50_vm3 = vcmask 523264  }
   0x7   :  { %v74_v13 = vld [vmem:[%s252_s2 + $0x20] sm:$0xff]  ;;  %v73_v14 = vld [vmem:[%s252_s2 + $0x18] sm:$0xff]  ;;  %v72_v15 = vld [vmem:[%s252_s2 + $0x10] sm:$0xff]  ;;  %vm52_vm4 = vcmask 654336   ;;  %vm54_vm5 = vcmask 785408   ;;  %vm56_vm6 = vcmask 916480  }
   0x8   :  { %v134_v1 = vpop.eup %133  ;;  %88 = vmatpush.msra.mxu0 %v83_v4  ;;  %v71_v16 = vld [vmem:[%s252_s2 + $0x8] sm:$0xff]  ;;  %v70_v17 = vld [vmem:[%s252_s2] sm:$0xff]  ;;  %s170_s25 = smov [#allocation3]   ;;  %s115_s29 = sshll.u32 %s253_s3, 4  ;;  %s116_s29 = int_to_ptr.hbm [resolvable:$true] %s115_s29 }
   0x9   :  { %23 = vrot.lane.b32.xlu0 %v134_v1, %s163_s14  ;;  %29 = vrot.lane.b32.xlu1 %v134_v1, %s164_s15  ;;  %v132_v29 = vld [vmem:[%s251_s1] ss:$0 sm:$0xff]  ;;  %s113_s26 = sshll.u32 %s170_s25, 4  ;;  %s114_s26 = int_to_ptr.vmem [resolvable:$true] %s113_s26 }
   0xa   :  { %35 = vrot.lane.b32.xlu2 %v134_v1, %s165_s16  ;;  %89 = vmatpush.msra.mxu0 %v82_v5 }
   0xc   :  { %90 = vmatpush.msra.mxu0 %v81_v6 }
   0xe   :  { %91 = vmatpush.msra.mxu0 %v80_v7 }
  0x10   :  { %92 = vmatpush.msra.mxu0 %v79_v8 }
  0x11   :  { %26 = vrot.lane.b32.xlu0 %v134_v1, %s166_s17  ;;  %32 = vrot.lane.b32.xlu1 %v134_v1, %s167_s18 }
  0x12   :  { %38 = vrot.lane.b32.xlu2 %v134_v1, %s168_s19  ;;  %93 = vmatpush.msra.mxu0 %v78_v9 }
  0x14   :  { %94 = vmatpush.msra.mxu0 %v77_v10 }
  0x16   :  { %95 = vmatpush.msra.mxu0 %v76_v11 }
  0x18   :  { %96 = vmatpush.msra.mxu0 %v75_v12 }
  0x19   :  { %41 = vrot.lane.b32.xlu0 %v134_v1, %s169_s20 }
  0x1a   :  { %97 = vmatpush.msra.mxu0 %v74_v13 }
  0x1c   :  { %98 = vmatpush.msra.mxu0 %v73_v14 }
  0x1e   :  { %99 = vmatpush.msra.mxu0 %v72_v15 }
  0x20   :  { %100 = vmatpush.msra.mxu0 %v71_v16 }
  0x22   :  { %101 = vmatpush.msra.mxu0 %v70_v17 }
  0x64   :  { %v36_v20 = vpop.permute.xlu2 %35 }
  0x6c   :  { %v39_v27 = vpop.permute.xlu2 %38 }
  0x7b   :  { %v24_v18 = vpop.permute.xlu0 %23  ;;  %v30_v19 = vpop.permute.xlu1 %29 }
  0x7c   :  { %v45_v21 = vsel %vm44_vm0, %v134_v1, %v24_v18 }
  0x83   :  { %v27_v22 = vpop.permute.xlu0 %26  ;;  %v33_v23 = vpop.permute.xlu1 %32 }
  0x84   :  { %v47_v24 = vsel %vm46_vm1, %v45_v21, %v27_v22 }
  0x85   :  { %v49_v25 = vsel %vm48_vm2, %v47_v24, %v30_v19 }
  0x86   :  { %v51_v26 = vsel %vm50_vm3, %v49_v25, %v33_v23 }
  0x87   :  { %v53_v28 = vsel %vm52_vm4, %v51_v26, %v36_v20 }
  0x88   :  { %v55_v30 = vsel %vm54_vm5, %v53_v28, %v39_v27 }
  0x8b   :  { %v42_v31 = vpop.permute.xlu0 %41 }
  0x8c   :  { %v57_v32 = vsel %vm56_vm6, %v55_v30, %v42_v31 }
  0x8d   :  { %v62_v33 = vsub.f32 %v57_v32, %v132_v29 }
  0x8f   :  { %v63_v34 = vmul.f32 7.0, %v62_v33 }
  0x91   :  { %v64_v35 = vmul.f32 -0.5, %v63_v34 }
  0x93   :  { %v65_v36 = vmul.f32 %v64_v35, %v63_v34 }
  0x95   :  { %v66_v37 = vmul.f32 1.442695, %v65_v36 }
  0x97   :  { %135 = vpow2.f32 %v66_v37 }
  0x9d   :  { %v136_v38 = vpop.eup %135 }
  0x9e   :  { %102 = vmatmul.f32.vlgmr.msra.gmra.mxu0 %v136_v38 }
 0x11b   :  { %v103_v39 = vpop.f32.mrf.mxu0 }
 0x11c   :  { %107 = vst.msk [vmem:[#allocation3] sm:$0xff] %vm46_vm1, %v103_v39 }
 0x11d   :  { %118 = dma.vmem_to_hbm [thread:$0]  %s114_s26, 128, %s116_s29, [#allocation4]  }
 0x11e   :  { %161 = dma.done.wait [#allocation4], 128  }
 0x11f   :  { %162 = vsyncadd [#allocation4], 4294967168 }
 0x120   :  { %123 = vsyncpa [#allocation4], 1 }

</bundles_post_ra>
